<compile_context>
chip_gen: v6e
topology: v6e:2x2x1
jax: 0.10.0
libtpu: 0.0.40
codegen_flags: <defaults>
</compile_context>

<pallas_src>
import functools

import jax
import jax.numpy as jnp
from jax.experimental import pallas as pl
from jax.experimental.pallas import tpu as pltpu

DIN = 6          # logical input features
H1 = 128
H2 = 128
DOUT = 4         # logical output features
DOUT_PAD = 8     # narrow padded output width (W3/b3 zero-padded 4 -> 8)


def _round_up(n, m):
    return ((n + m - 1) // m) * m


def mlp_kernel(x_ref, w1_ref, b1_ref, w2_ref, b2_ref, w3_ref, b3_ref, o_ref):
    # x_ref: (tile_b, 6) f32.  Cast to bf16 in-register for the MXU.
    x = x_ref[...].astype(w1_ref.dtype)

    # Layer 1: (tile_b, 6) @ (6, 128) -> f32 accumulate, bias + ReLU in f32.
    h1 = jnp.dot(x, w1_ref[...], preferred_element_type=jnp.float32) + b1_ref[...]
    h1 = jnp.maximum(h1, 0.0)

    # Layer 2: (tile_b, 128) @ (128, 128)
    h2 = jnp.dot(h1.astype(w2_ref.dtype), w2_ref[...],
                 preferred_element_type=jnp.float32) + b2_ref[...]
    h2 = jnp.maximum(h2, 0.0)

    # Layer 3: (tile_b, 128) @ (128, 8) -- last 4 output columns are zero-padded.
    out = jnp.dot(h2.astype(w3_ref.dtype), w3_ref[...],
                  preferred_element_type=jnp.float32) + b3_ref[...]
    o_ref[...] = out.astype(o_ref.dtype)


def prepare_params(params, compute_dtype=jnp.bfloat16):
    """One-time conversion of [in, out]-layout f32 params to kernel-ready arrays.

    Hoisted out of the forward path so the per-call graph has no pad/convert ops.
    """
    w1, b1, w2, b2, w3, b3 = params
    w1_p = w1.astype(compute_dtype)                       # (6, 128) bf16
    w2_p = w2.astype(compute_dtype)                       # (128, 128) bf16
    w3_p = jnp.zeros((H2, DOUT_PAD), compute_dtype).at[:, :DOUT].set(
        w3.astype(compute_dtype))                         # (128, 8) bf16
    b1_p = b1.reshape(1, H1).astype(jnp.float32)
    b2_p = b2.reshape(1, H2).astype(jnp.float32)
    b3_p = jnp.zeros((1, DOUT_PAD), jnp.float32).at[:, :DOUT].set(
        b3.reshape(1, DOUT).astype(jnp.float32))
    return (w1_p, b1_p, w2_p, b2_p, w3_p, b3_p)


@functools.partial(jax.jit, static_argnames=("tile_b",))
def dynnet_forward(x, prepared_params, *, tile_b=1024):
    """x: [B, 6] float32 -> [B, 4] float32. prepared_params from prepare_params()."""
    w1_p, b1_p, w2_p, b2_p, w3_p, b3_p = prepared_params
    B, din = x.shape
    assert din == DIN

    # Small batch: single grid step with tile rounded to a multiple of 16
    # (bf16 packs two rows per sublane).  Large batch: fixed tile, pad ragged tail.
    if B <= tile_b:
        tile_b_eff = _round_up(B, 16)
    else:
        tile_b_eff = _round_up(tile_b, 16)
    b_pad = _round_up(B, tile_b_eff)
    grid = (b_pad // tile_b_eff,)

    # Batch-pad only (no feature pad, no dtype cast copy in the wrapper).
    if b_pad != B:
        x_in = jnp.pad(x, ((0, b_pad - B), (0, 0)))
    else:
        x_in = x

    out_padded = pl.pallas_call(
        mlp_kernel,
        out_shape=jax.ShapeDtypeStruct((b_pad, DOUT_PAD), jnp.float32),
        grid_spec=pltpu.PrefetchScalarGridSpec(
            num_scalar_prefetch=0,
            grid=grid,
            in_specs=[
                pl.BlockSpec((tile_b_eff, DIN), lambda i: (i, 0)),   # x tile (f32)
                pl.BlockSpec((DIN, H1), lambda i: (0, 0)),           # W1 (resident)
                pl.BlockSpec((1, H1), lambda i: (0, 0)),             # b1
                pl.BlockSpec((H1, H2), lambda i: (0, 0)),            # W2 (resident)
                pl.BlockSpec((1, H2), lambda i: (0, 0)),             # b2
                pl.BlockSpec((H2, DOUT_PAD), lambda i: (0, 0)),      # W3 (resident, 8-wide)
                pl.BlockSpec((1, DOUT_PAD), lambda i: (0, 0)),       # b3 (8-wide)
            ],
            out_specs=pl.BlockSpec((tile_b_eff, DOUT_PAD), lambda i: (i, 0)),
        ),
        compiler_params=pltpu.CompilerParams(
            dimension_semantics=("parallel",),   # shard grid steps across v7x's 2 TCs
        ),
    )(x_in, w1_p, b1_p, w2_p, b2_p, w3_p, b3_p)

    # Strip batch padding and the 4 zero output lanes.
    return out_padded[:B, :DOUT]


def init_params(key):
    """Deterministic init mirroring DynNet.__init__ shapes (stored [in, out])."""
    k1, k2, k3, k4, k5, k6 = jax.random.split(key, 6)
    w1 = jax.random.uniform(k1, (DIN, H1), jnp.float32, -1.0, 1.0) / jnp.sqrt(6.0)
    b1 = jax.random.uniform(k2, (1, H1), jnp.float32, -1.0, 1.0) / jnp.sqrt(6.0)
    w2 = jax.random.uniform(k3, (H1, H2), jnp.float32, -1.0, 1.0) / jnp.sqrt(128.0)
    b2 = jax.random.uniform(k4, (1, H2), jnp.float32, -1.0, 1.0) / jnp.sqrt(128.0)
    w3 = jax.random.uniform(k5, (H2, DOUT), jnp.float32, -1.0, 1.0) / jnp.sqrt(128.0)
    b3 = jax.random.uniform(k6, (1, DOUT), jnp.float32, -1.0, 1.0) / jnp.sqrt(128.0)
    return (w1, b1, w2, b2, w3, b3)


def reference_forward(x, params, compute_dtype=jnp.bfloat16):
    """Pure-JAX reference using the same bf16 operand cast as the kernel (f32 accum)."""
    w1, b1, w2, b2, w3, b3 = params
    c = lambda a: a.astype(compute_dtype).astype(jnp.float32)
    h1 = jnp.maximum(c(x) @ c(w1) + b1, 0.0)
    h2 = jnp.maximum(c(h1) @ c(w2) + b2, 0.0)
    return c(h2) @ c(w3) + b3


if __name__ == "__main__":
    key = jax.random.PRNGKey(0)
    kx, kp = jax.random.split(key)

    # Small, non-multiple-of-16 batch to exercise the ragged-tail batch padding path.
    B = 37
    x = jax.random.normal(kx, (B, DIN), jnp.float32)
    params = init_params(kp)
    prepared = prepare_params(params)

    out = dynnet_forward(x, prepared)
    out = jax.block_until_ready(out)

    ref = reference_forward(x, params)
    assert out.shape == (B, DOUT)
    assert jnp.allclose(out, ref, atol=5e-3, rtol=5e-3), "mismatch vs reference"
    assert bool(jnp.all(jnp.isfinite(out))), "non-finite output"

    print("KERNEL_OK")
</pallas_src>

<mosaic_0001>
module attributes {stable_mosaic.version = 11 : i64} {
  func.func @mlp_kernel(%arg0: i32, %arg1: memref<48x6xf32, #tpu.memory_space<vmem>>, %arg2: memref<6x128xbf16, #tpu.memory_space<vmem>>, %arg3: memref<1x128xf32, #tpu.memory_space<vmem>>, %arg4: memref<128x128xbf16, #tpu.memory_space<vmem>>, %arg5: memref<1x128xf32, #tpu.memory_space<vmem>>, %arg6: memref<128x8xbf16, #tpu.memory_space<vmem>>, %arg7: memref<1x8xf32, #tpu.memory_space<vmem>>, %arg8: memref<48x8xf32, #tpu.memory_space<vmem>>) attributes {dimension_semantics = [#tpu.dimension_semantics<parallel>], iteration_bounds = array<i64: 1>, scalar_prefetch = 0 : i64, scratch_operands = 0 : i64, tpu.core_type = #tpu.core_type<tc>, window_params = [{transform_indices = @transform_0, window_bounds = array<i64: 48, 6>}, {pipeline_mode = #tpu.pipeline_mode<synchronous>, transform_indices = @transform_1, window_bounds = array<i64: 6, 128>}, {pipeline_mode = #tpu.pipeline_mode<synchronous>, transform_indices = @transform_2, window_bounds = array<i64: 1, 128>}, {pipeline_mode = #tpu.pipeline_mode<synchronous>, transform_indices = @transform_3, window_bounds = array<i64: 128, 128>}, {pipeline_mode = #tpu.pipeline_mode<synchronous>, transform_indices = @transform_4, window_bounds = array<i64: 1, 128>}, {pipeline_mode = #tpu.pipeline_mode<synchronous>, transform_indices = @transform_5, window_bounds = array<i64: 128, 8>}, {pipeline_mode = #tpu.pipeline_mode<synchronous>, transform_indices = @transform_6, window_bounds = array<i64: 1, 8>}, {transform_indices = @transform_7, window_bounds = array<i64: 48, 8>}]} {
    %c0 = arith.constant 0 : index
    %c0_0 = arith.constant 0 : index
    %0 = vector.load %arg1[%c0, %c0_0] : memref<48x6xf32, #tpu.memory_space<vmem>>, vector<48x6xf32>
    %1 = arith.truncf %0 : vector<48x6xf32> to vector<48x6xbf16>
    %c0_1 = arith.constant 0 : index
    %c0_2 = arith.constant 0 : index
    %2 = vector.load %arg2[%c0_1, %c0_2] : memref<6x128xbf16, #tpu.memory_space<vmem>>, vector<6x128xbf16>
    %cst = arith.constant dense<0.000000e+00> : vector<48x128xf32>
    %3 = tpu.matmul %1, %2, %cst {dimension_numbers = #tpu.dot_dimension_numbers<[1], [0], [0], [1], [0, 0, 1, 1], [], []>} : vector<48x6xbf16>, vector<6x128xbf16>, vector<48x128xf32> -> vector<48x128xf32>
    %c0_3 = arith.constant 0 : index
    %c0_4 = arith.constant 0 : index
    %4 = vector.load %arg3[%c0_3, %c0_4] : memref<1x128xf32, #tpu.memory_space<vmem>>, vector<1x128xf32>
    %5 = vector.broadcast %4 : vector<1x128xf32> to vector<48x128xf32>
    %6 = arith.addf %3, %5 : vector<48x128xf32>
    %cst_5 = arith.constant 0.000000e+00 : f32
    %7 = vector.broadcast %cst_5 : f32 to vector<48x128xf32>
    %8 = arith.maximumf %6, %7 : vector<48x128xf32>
    %9 = arith.truncf %8 : vector<48x128xf32> to vector<48x128xbf16>
    %c0_6 = arith.constant 0 : index
    %c0_7 = arith.constant 0 : index
    %10 = vector.load %arg4[%c0_6, %c0_7] : memref<128x128xbf16, #tpu.memory_space<vmem>>, vector<128x128xbf16>
    %cst_8 = arith.constant dense<0.000000e+00> : vector<48x128xf32>
    %11 = tpu.matmul %9, %10, %cst_8 {dimension_numbers = #tpu.dot_dimension_numbers<[1], [0], [0], [1], [0, 0, 1, 1], [], []>} : vector<48x128xbf16>, vector<128x128xbf16>, vector<48x128xf32> -> vector<48x128xf32>
    %c0_9 = arith.constant 0 : index
    %c0_10 = arith.constant 0 : index
    %12 = vector.load %arg5[%c0_9, %c0_10] : memref<1x128xf32, #tpu.memory_space<vmem>>, vector<1x128xf32>
    %13 = vector.broadcast %12 : vector<1x128xf32> to vector<48x128xf32>
    %14 = arith.addf %11, %13 : vector<48x128xf32>
    %cst_11 = arith.constant 0.000000e+00 : f32
    %15 = vector.broadcast %cst_11 : f32 to vector<48x128xf32>
    %16 = arith.maximumf %14, %15 : vector<48x128xf32>
    %17 = arith.truncf %16 : vector<48x128xf32> to vector<48x128xbf16>
    %c0_12 = arith.constant 0 : index
    %c0_13 = arith.constant 0 : index
    %18 = vector.load %arg6[%c0_12, %c0_13] : memref<128x8xbf16, #tpu.memory_space<vmem>>, vector<128x8xbf16>
    %cst_14 = arith.constant dense<0.000000e+00> : vector<48x8xf32>
    %19 = tpu.matmul %17, %18, %cst_14 {dimension_numbers = #tpu.dot_dimension_numbers<[1], [0], [0], [1], [0, 0, 1, 1], [], []>} : vector<48x128xbf16>, vector<128x8xbf16>, vector<48x8xf32> -> vector<48x8xf32>
    %c0_15 = arith.constant 0 : index
    %c0_16 = arith.constant 0 : index
    %20 = vector.load %arg7[%c0_15, %c0_16] : memref<1x8xf32, #tpu.memory_space<vmem>>, vector<1x8xf32>
    %21 = vector.broadcast %20 : vector<1x8xf32> to vector<48x8xf32>
    %22 = arith.addf %19, %21 : vector<48x8xf32>
    %c0_17 = arith.constant 0 : index
    %c0_18 = arith.constant 0 : index
    %23 = vector.load %arg8[%c0_17, %c0_18] : memref<48x8xf32, #tpu.memory_space<vmem>>, vector<48x8xf32>
    tpu.vector_store %arg8[%c0_17, %c0_18], %22 {strides = array<i32>} : memref<48x8xf32, #tpu.memory_space<vmem>>, vector<48x8xf32>,
    return
  }
  func.func @transform_0(%arg0: i32) -> (i32, i32) {
    %c0_i32 = arith.constant 0 : i32
    %c0_i32_0 = arith.constant 0 : i32
    return %arg0, %c0_i32 : i32, i32
  }
  func.func @transform_1(%arg0: i32) -> (i32, i32) {
    %c0_i32 = arith.constant 0 : i32
    %c0_i32_0 = arith.constant 0 : i32
    %c0_i32_1 = arith.constant 0 : i32
    return %c0_i32, %c0_i32_0 : i32, i32
  }
  func.func @transform_2(%arg0: i32) -> (i32, i32) {
    %c0_i32 = arith.constant 0 : i32
    %c0_i32_0 = arith.constant 0 : i32
    %c0_i32_1 = arith.constant 0 : i32
    return %c0_i32, %c0_i32_0 : i32, i32
  }
  func.func @transform_3(%arg0: i32) -> (i32, i32) {
    %c0_i32 = arith.constant 0 : i32
    %c0_i32_0 = arith.constant 0 : i32
    %c0_i32_1 = arith.constant 0 : i32
    return %c0_i32, %c0_i32_0 : i32, i32
  }
  func.func @transform_4(%arg0: i32) -> (i32, i32) {
    %c0_i32 = arith.constant 0 : i32
    %c0_i32_0 = arith.constant 0 : i32
    %c0_i32_1 = arith.constant 0 : i32
    return %c0_i32, %c0_i32_0 : i32, i32
  }
  func.func @transform_5(%arg0: i32) -> (i32, i32) {
    %c0_i32 = arith.constant 0 : i32
    %c0_i32_0 = arith.constant 0 : i32
    %c0_i32_1 = arith.constant 0 : i32
    return %c0_i32, %c0_i32_0 : i32, i32
  }
  func.func @transform_6(%arg0: i32) -> (i32, i32) {
    %c0_i32 = arith.constant 0 : i32
    %c0_i32_0 = arith.constant 0 : i32
    %c0_i32_1 = arith.constant 0 : i32
    return %c0_i32, %c0_i32_0 : i32, i32
  }
  func.func @transform_7(%arg0: i32) -> (i32, i32) {
    %c0_i32 = arith.constant 0 : i32
    %c0_i32_0 = arith.constant 0 : i32
    return %arg0, %c0_i32 : i32, i32
  }
}

</mosaic_0001>

<bundles_post_ra>
// kernel: dynnet_forward.1
= control target key start
LH: loop header
LB: loop body
LE: loop exit
PB: predicated region body
PF: predicated region fallthrough
CT: control target
= control target key end

     0   :  { %vm54_vm0 = vcmask 1042432   ;;  %v536_v0 = vmov 0.0   ;;  %vm537_vm1 = vmmov 0   ;;  %vm44_vm2 = vcmask 48128   ;;  %s718_s1 = inlined_call_operand.vmem [shape: bf16[6,128], index: 1, kind: input, shape index: {}]   ;;  %s719_s0 = inlined_call_operand.vmem [shape: f32[48,6], index: 0, kind: input, shape index: {}]   ;;  %s720_s3 = inlined_call_operand.vmem [shape: bf16[128,128], index: 3, kind: input, shape index: {}]   ;;  %s721_s5 = inlined_call_operand.vmem [shape: bf16[128,8], index: 5, kind: input, shape index: {}]   ;;  %s722_s2 = inlined_call_operand.vmem [shape: f32[1,128], index: 2, kind: input, shape index: {}]   ;;  %s723_s4 = inlined_call_operand.vmem [shape: f32[1,128], index: 4, kind: input, shape index: {}]   ;;  %s724_s6 = inlined_call_operand.vmem [shape: f32[1,8], index: 6, kind: input, shape index: {}]   ;;  %s725_s7 = inlined_call_operand.vmem [shape: f32[48,8], index: 7, kind: output, shape index: {}]  }
   0x1   :  { %448 = vmatprep.subr.bf16.mxu0 %v536_v0  ;;  %v36_v1 = vld [vmem:[%s718_s1] sm:$0x7]  ;;  %450 = vmatprep.mubr.msk.bf16.mxu0 %vm537_vm1, %v536_v0  ;;  %v28_v3 = vld [vmem:[%s719_s0 + $0x8] sm:$0xff]  ;;  %v520_v6 = vld [vmem:[%s720_s3 + $0x38] sm:$0xff]   ;;  %vm389_vm3 = vcmask 64512  }
   0x2   :  { %v27_v2 = vld [vmem:[%s719_s0] sm:$0xff]  ;;  %v56_v4 = vsel %vm54_vm0, %v36_v1, 0  ;;  %462 = vmatprep.subr.bf16.mxu1 %v536_v0  ;;  %478 = vmatprep.mubr.msk.bf16.mxu1 %vm537_vm1, %v536_v0  ;;  %v29_v7 = vld [vmem:[%s719_s0 + $0x10] sm:$0xff]  ;;  %v30_v9 = vld [vmem:[%s719_s0 + $0x18] sm:$0xff] }
   0x3   :  { %v33_v5 = vpack.c.bf16 %v28_v3, %v27_v2  ;;  %449 = vmatpush3.bf16.msra.mxu0 %v56_v4  ;;  %463 = vmatpush3.bf16.msra.mxu1 %v520_v6  ;;  %v521_v8 = vld [vmem:[%s720_s3 + $0x30] sm:$0xff]   ;;  %v34_v10 = vpack.c.bf16 %v30_v9, %v29_v7  ;;  %v522_v11 = vld [vmem:[%s720_s3 + $0x28] sm:$0xff]   ;;  %v523_v12 = vld [vmem:[%s720_s3 + $0x20] sm:$0xff]  }
   0x4   :  { %490 = vmatprep.subr.bf16.mxu0 %v536_v0  ;;  %464 = vmatprep.subr.bf16.mxu1 %v536_v0  ;;  %v31_v13 = vld [vmem:[%s719_s0 + $0x20] sm:$0xff]  ;;  %v32_v14 = vld [vmem:[%s719_s0 + $0x28] sm:$0xff]  ;;  %v524_v16 = vld [vmem:[%s720_s3 + $0x18] sm:$0xff]  }
   0x5   :  { %v35_v15 = vpack.c.bf16 %v32_v14, %v31_v13  ;;  %v525_v17 = vld [vmem:[%s720_s3 + $0x10] sm:$0xff]   ;;  %v526_v18 = vld [vmem:[%s720_s3 + $0x8] sm:$0xff]   ;;  %v527_v19 = vld [vmem:[%s720_s3] sm:$0xff]  }
   0x6   :  { %451 = vmatmul.mubr.msk.bf16.vlgmr.msra.gmra.mxu0 %vm44_vm2, %v33_v5  ;;  %v528_v20 = vld [vmem:[%s721_s5 + $0x38] sm:$0xff]   ;;  %v529_v21 = vld [vmem:[%s721_s5 + $0x30] sm:$0xff]   ;;  %v530_v22 = vld [vmem:[%s721_s5 + $0x28] sm:$0xff]  }
   0x7   :  { %454 = vmatprep.mubr.msk.bf16.mxu0 %vm537_vm1, %v536_v0  ;;  %465 = vmatpush3.bf16.msra.mxu1 %v521_v8  ;;  %v531_v23 = vld [vmem:[%s721_s5 + $0x20] sm:$0xff]   ;;  %v532_v24 = vld [vmem:[%s721_s5 + $0x18] sm:$0xff]   ;;  %v533_v53 = vld [vmem:[%s721_s5 + $0x10] sm:$0xff]  }
   0x8   :  { %466 = vmatprep.subr.bf16.mxu1 %v536_v0  ;;  %491 = vmatpush3.bf16.msra.mxu0 %v528_v20  ;;  %v400_v25 = vld [vmem:[%s722_s2] ss:$0 sm:$0xff]  ;;  %v534_v54 = vld [vmem:[%s721_s5 + $0x8] sm:$0xff]  }
   0x9   :  { %492 = vmatprep.subr.bf16.mxu0 %v536_v0  ;;  %v535_v55 = vld [vmem:[%s721_s5] sm:$0xff]  }
   0xa   :  { %v404_v56 = vld [vmem:[%s723_s4] ss:$0 sm:$0xff] }
   0xb   :  { %467 = vmatpush3.bf16.msra.mxu1 %v522_v11 }
   0xc   :  { %468 = vmatprep.subr.bf16.mxu1 %v536_v0  ;;  %493 = vmatpush3.bf16.msra.mxu0 %v529_v21  ;;  %v413_v21 = vld [vmem:[%s724_s6] ss:$0 sm:$0xff] }
   0xd   :  { %494 = vmatprep.subr.bf16.mxu0 %v536_v0 }
   0xe   :  { %455 = vmatmul.mubr.msk.bf16.gmra.mxu0 %vm44_vm2, %v34_v10 }
   0xf   :  { %458 = vmatprep.mubr.msk.bf16.mxu0 %vm537_vm1, %v536_v0  ;;  %469 = vmatpush3.bf16.msra.mxu1 %v523_v12 }
  0x10   :  { %470 = vmatprep.subr.bf16.mxu1 %v536_v0  ;;  %495 = vmatpush3.bf16.msra.mxu0 %v530_v22 }
  0x11   :  { %496 = vmatprep.subr.bf16.mxu0 %v536_v0 }
  0x13   :  { %471 = vmatpush3.bf16.msra.mxu1 %v524_v16 }
  0x14   :  { %472 = vmatprep.subr.bf16.mxu1 %v536_v0  ;;  %497 = vmatpush3.bf16.msra.mxu0 %v531_v23 }
  0x15   :  { %498 = vmatprep.subr.bf16.mxu0 %v536_v0 }
  0x16   :  { %459 = vmatmul.mubr.msk.bf16.gmra.mxu0 %vm44_vm2, %v35_v15 }
  0x17   :  { %506 = vmatprep.mubr.msk.bf16.mxu0 %vm537_vm1, %v536_v0  ;;  %473 = vmatpush3.bf16.msra.mxu1 %v525_v17 }
  0x18   :  { %474 = vmatprep.subr.bf16.mxu1 %v536_v0  ;;  %499 = vmatpush3.bf16.msra.mxu0 %v532_v24 }
  0x19   :  { %500 = vmatprep.subr.bf16.mxu0 %v536_v0 }
  0x1b   :  { %475 = vmatpush3.bf16.msra.mxu1 %v526_v18 }
  0x1c   :  { %476 = vmatprep.subr.bf16.mxu1 %v536_v0  ;;  %501 = vmatpush3.bf16.msra.mxu0 %v533_v53 }
  0x1d   :  { %502 = vmatprep.subr.bf16.mxu0 %v536_v0 }
  0x1f   :  { %477 = vmatpush3.bf16.msra.mxu1 %v527_v19 }
  0x20   :  { %503 = vmatpush3.bf16.msra.mxu0 %v534_v54 }
  0x21   :  { %504 = vmatprep.subr.bf16.mxu0 %v536_v0 }
  0x24   :  { %505 = vmatpush3.bf16.msra.mxu0 %v535_v55 }
  0xc6   :  { %v92_v26 = vpop.f32.mrf.mxu0 }
  0xc7   :  { %v93_v28 = vadd.f32 %v400_v25, %v92_v26 }
  0xc8   :  { %v452_v27 = vpop.f32.mrf.mxu0 }
  0xc9   :  { %v115_v32 = vmax.f32 %v93_v28, 0.0 }
  0xca   :  { %v95_v29 = vpop.f32.mrf.mxu0 }
  0xcb   :  { %v96_v30 = vadd.f32 %v400_v25, %v95_v29 }
  0xcc   :  { %v453_v31 = vpop.f32.mrf.mxu0 }
  0xcd   :  { %v116_v33 = vmax.f32 %v96_v30, 0.0 }
  0xce   :  { %v100_v34 = vpop.f32.mrf.mxu0 }
  0xcf   :  { %v121_v35 = vpack.c.bf16 %v116_v33, %v115_v32  ;;  %v101_v37 = vadd.f32 %v400_v25, %v100_v34 }
  0xd0   :  { %v456_v36 = vpop.f32.mrf.mxu0 }
  0xd1   :  { %479 = vmatmul.mubr.bf16.vlgmr.msra.gmra.mxu1 %v121_v35  ;;  %v117_v41 = vmax.f32 %v101_v37, 0.0 }
  0xd2   :  { %v103_v38 = vpop.f32.mrf.mxu0  ;;  %482 = vmatprep.mubr.msk.bf16.mxu1 %vm537_vm1, %v536_v0 }
  0xd3   :  { %v104_v39 = vadd.f32 %v400_v25, %v103_v38 }
  0xd4   :  { %v457_v40 = vpop.f32.mrf.mxu0 }
  0xd5   :  { %v118_v42 = vmax.f32 %v104_v39, 0.0 }
  0xd6   :  { %v108_v43 = vpop.f32.mrf.mxu0 }
  0xd7   :  { %v122_v44 = vpack.c.bf16 %v118_v42, %v117_v41  ;;  %v109_v46 = vadd.f32 %v400_v25, %v108_v43 }
  0xd8   :  { %v460_v45 = vpop.f32.mrf.mxu0 }
  0xd9   :  { %483 = vmatmul.mubr.bf16.gmra.mxu1 %v122_v44  ;;  %v119_v50 = vmax.f32 %v109_v46, 0.0 }
  0xda   :  { %v111_v47 = vpop.f32.mrf.mxu0  ;;  %486 = vmatprep.mubr.msk.bf16.mxu1 %vm537_vm1, %v536_v0 }
  0xdb   :  { %v112_v48 = vadd.f32 %v400_v25, %v111_v47 }
  0xdc   :  { %v461_v49 = vpop.f32.mrf.mxu0 }
  0xdd   :  { %v120_v51 = vmax.f32 %v112_v48, 0.0 }
  0xdf   :  { %v123_v52 = vpack.c.bf16 %v120_v51, %v119_v50 }
  0xe1   :  { %487 = vmatmul.mubr.bf16.gmra.mxu1 %v123_v52 }
 0x191   :  { %v229_v57 = vpop.f32.mrf.mxu1 }
 0x192   :  { %v230_v59 = vadd.f32 %v404_v56, %v229_v57 }
 0x193   :  { %v480_v58 = vpop.f32.mrf.mxu1 }
 0x194   :  { %v252_v63 = vmax.f32 %v230_v59, 0.0 }
 0x195   :  { %v232_v60 = vpop.f32.mrf.mxu1 }
 0x196   :  { %v233_v61 = vadd.f32 %v404_v56, %v232_v60 }
 0x197   :  { %v481_v62 = vpop.f32.mrf.mxu1 }
 0x198   :  { %v253_v1 = vmax.f32 %v233_v61, 0.0 }
 0x199   :  { %v237_v2 = vpop.f32.mrf.mxu1 }
 0x19a   :  { %v258_v3 = vpack.c.bf16 %v253_v1, %v252_v63  ;;  %v238_v5 = vadd.f32 %v404_v56, %v237_v2 }
 0x19b   :  { %v484_v4 = vpop.f32.mrf.mxu1 }
 0x19c   :  { %507 = vmatmul.mubr.bf16.vlgmr.msra.gmra.mxu0 %v258_v3  ;;  %v254_v9 = vmax.f32 %v238_v5, 0.0 }
 0x19d   :  { %v240_v6 = vpop.f32.mrf.mxu1  ;;  %510 = vmatprep.mubr.msk.bf16.mxu0 %vm537_vm1, %v536_v0 }
 0x19e   :  { %v241_v7 = vadd.f32 %v404_v56, %v240_v6 }
 0x19f   :  { %v485_v8 = vpop.f32.mrf.mxu1 }
 0x1a0   :  { %v255_v10 = vmax.f32 %v241_v7, 0.0 }
 0x1a1   :  { %v245_v11 = vpop.f32.mrf.mxu1 }
 0x1a2   :  { %v259_v12 = vpack.c.bf16 %v255_v10, %v254_v9  ;;  %v246_v14 = vadd.f32 %v404_v56, %v245_v11 }
 0x1a3   :  { %v488_v13 = vpop.f32.mrf.mxu1 }
 0x1a4   :  { %511 = vmatmul.mubr.bf16.gmra.mxu0 %v259_v12  ;;  %v256_v18 = vmax.f32 %v246_v14, 0.0 }
 0x1a5   :  { %v248_v15 = vpop.f32.mrf.mxu1  ;;  %514 = vmatprep.mubr.msk.bf16.mxu0 %vm537_vm1, %v536_v0 }
 0x1a6   :  { %v249_v16 = vadd.f32 %v404_v56, %v248_v15 }
 0x1a7   :  { %v489_v17 = vpop.f32.mrf.mxu1 }
 0x1a8   :  { %v257_v19 = vmax.f32 %v249_v16, 0.0 }
 0x1aa   :  { %v260_v20 = vpack.c.bf16 %v257_v19, %v256_v18 }
 0x1ac   :  { %515 = vmatmul.mubr.bf16.gmra.mxu0 %v260_v20 }
 0x25c   :  { %v366_v22 = vpop.f32.mrf.mxu0 }
 0x25d   :  { %v367_v23 = vadd.f32 %v413_v21, %v366_v22 }
 0x25e   :  { %v508_v24 = vpop.f32.mrf.mxu0 }
 0x25f   :  { %390 = vst.msk [vmem:[%s725_s7] sm:$0xff] %vm389_vm3, %v367_v23 }
 0x260   :  { %v369_v0 = vpop.f32.mrf.mxu0 }
 0x261   :  { %v370_v25 = vadd.f32 %v413_v21, %v369_v0 }
 0x262   :  { %v509_v26 = vpop.f32.mrf.mxu0 }
 0x263   :  { %391 = vst.msk [vmem:[%s725_s7 + $0x8] sm:$0xff] %vm389_vm3, %v370_v25 }
 0x264   :  { %v374_v27 = vpop.f32.mrf.mxu0 }
 0x265   :  { %v375_v28 = vadd.f32 %v413_v21, %v374_v27 }
 0x266   :  { %v512_v29 = vpop.f32.mrf.mxu0 }
 0x267   :  { %392 = vst.msk [vmem:[%s725_s7 + $0x10] sm:$0xff] %vm389_vm3, %v375_v28 }
 0x268   :  { %v377_v30 = vpop.f32.mrf.mxu0 }
 0x269   :  { %v378_v31 = vadd.f32 %v413_v21, %v377_v30 }
 0x26a   :  { %v513_v32 = vpop.f32.mrf.mxu0 }
 0x26b   :  { %393 = vst.msk [vmem:[%s725_s7 + $0x18] sm:$0xff] %vm389_vm3, %v378_v31 }
 0x26c   :  { %v382_v33 = vpop.f32.mrf.mxu0 }
 0x26d   :  { %v383_v34 = vadd.f32 %v413_v21, %v382_v33 }
 0x26e   :  { %v516_v35 = vpop.f32.mrf.mxu0 }
 0x26f   :  { %394 = vst.msk [vmem:[%s725_s7 + $0x20] sm:$0xff] %vm389_vm3, %v383_v34 }
 0x270   :  { %v385_v36 = vpop.f32.mrf.mxu0 }
 0x271   :  { %v386_v37 = vadd.f32 %v413_v21, %v385_v36 }
 0x272   :  { %v517_v38 = vpop.f32.mrf.mxu0 }
 0x273   :  { %395 = vst.msk [vmem:[%s725_s7 + $0x28] sm:$0xff] %vm389_vm3, %v386_v37 }

</bundles_post_ra>
